<compile_context>
chip_gen: v7x
topology: tpu7x:2x2x1
jax: 0.10.0
libtpu: 0.0.40
codegen_flags: <defaults>
</compile_context>

<pallas_src>
import numpy as np
import jax
import jax.numpy as jnp
from jax import lax
from jax.experimental import pallas as pl
from jax.experimental.pallas import tpu as pltpu


def _round_up(x, m):
    return ((x + m - 1) // m) * m


# ---------------------------------------------------------------------------
# Pallas kernel: one grid step per T-block of time steps (sequential
# recurrence -> single "arbitrary" grid axis; state handed off via scratch).
# ---------------------------------------------------------------------------
def _make_reservoir_kernel(has_x0: bool, unroll: int = 8):
    def kernel(*refs):
        if has_x0:
            u_ref, win_ref, what_ref, x0_ref, o_ref, x_carry = refs
        else:
            u_ref, win_ref, what_ref, o_ref, x_carry = refs

        b = pl.program_id(0)

        @pl.when(b == 0)
        def _():
            if has_x0:
                x_carry[...] = x0_ref[...].astype(jnp.float32)
            else:
                x_carry[...] = jnp.zeros_like(x_carry)

        cdtype = win_ref.dtype          # MXU operand dtype (bf16 by default)
        t_blk = o_ref.shape[0]

        # Batched input projection for the whole block: one MXU-friendly
        # (T_BLK, I) @ (I, R) matmul.  Staged into the output VMEM block
        # (row t is read back before being overwritten with x[t]).
        o_ref[...] = jnp.dot(u_ref[...].astype(cdtype), win_ref[...],
                             preferred_element_type=jnp.float32)

        # Recurrent weight tile, hoisted out of the step loop.
        what = what_ref[...]

        def step(t, x):
            # x: (1, R) float32 state, loop-carried in registers.
            h = o_ref[pl.ds(t, 1), :] + jnp.dot(
                x.astype(cdtype), what, preferred_element_type=jnp.float32)
            x_new = jnp.maximum(h, 0.0)                  # f = relu
            o_ref[pl.ds(t, 1), :] = x_new                # row t: u_proj -> x[t]
            return x_new

        x_final = lax.fori_loop(0, t_blk, step, x_carry[...], unroll=unroll)
        # Hand the state to the next T-block (next grid iteration).
        x_carry[...] = x_final

    return kernel


def reservoir_forward(inputs, W_in, W_hat, initial_state=None, *,
                      weight_dtype=jnp.bfloat16, t_block=128, unroll=8):
    """inputs: (seq_len, input_size) f32 -> (seq_len, reservoir_size) f32."""
    inputs = jnp.asarray(inputs, jnp.float32)
    seq_len, input_size = inputs.shape
    R = W_in.shape[0]

    # Weights fed transposed so every matmul is a row-major (.., K) @ (K, R).
    win_t = jnp.asarray(W_in).astype(weight_dtype).T       # (I, R)
    what_t = jnp.asarray(W_hat).astype(weight_dtype).T     # (R, R)

    # Time-block size: multiple of 8 (sublane), capped near seq_len.
    t_block = max(8, _round_up(min(int(t_block), _round_up(seq_len, 8)), 8))
    padded_len = _round_up(seq_len, t_block)
    if padded_len != seq_len:
        # Trailing (causal) padding: extra steps are computed then dropped.
        inputs = jnp.pad(inputs, ((0, padded_len - seq_len), (0, 0)))
    num_blocks = padded_len // t_block

    has_x0 = initial_state is not None
    operands = [inputs, win_t, what_t]
    in_specs = [
        pl.BlockSpec((t_block, input_size), lambda b: (b, 0)),  # u block (streamed)
        pl.BlockSpec((input_size, R), lambda b: (0, 0)),        # W_in^T  (resident)
        pl.BlockSpec((R, R), lambda b: (0, 0)),                 # W_hat^T (resident)
    ]
    if has_x0:
        x0 = jnp.asarray(initial_state, jnp.float32).reshape(1, R)
        operands.append(x0)
        in_specs.append(pl.BlockSpec((1, R), lambda b: (0, 0)))  # x_init (resident)

    out = pl.pallas_call(
        _make_reservoir_kernel(has_x0, unroll=unroll),
        out_shape=jax.ShapeDtypeStruct((padded_len, R), jnp.float32),
        grid_spec=pltpu.PrefetchScalarGridSpec(
            num_scalar_prefetch=0,
            grid=(num_blocks,),
            in_specs=in_specs,
            out_specs=pl.BlockSpec((t_block, R), lambda b: (b, 0)),
            scratch_shapes=[pltpu.VMEM((1, R), jnp.float32)],   # state hand-off
        ),
        # True recurrence along time -> must stay sequential.
        compiler_params=pltpu.CompilerParams(
            dimension_semantics=("arbitrary",)),
    )(*operands)

    return out[:seq_len] if padded_len != seq_len else out


# ---------------------------------------------------------------------------
# Deterministic parameter construction mirroring reservoir.__init__
# ---------------------------------------------------------------------------
def make_reservoir_params(key, input_size, reservoir_size,
                          contractivity_coeff=0.9, density=1.0, scale_in=1.0):
    k1, k2, k3 = jax.random.split(key, 3)

    # W_in = scale_in * (rand * 2 - 1)
    W_in = scale_in * (jax.random.uniform(k1, (reservoir_size, input_size)) * 2.0 - 1.0)

    # W_hat = to_sparse(rand * 2 - 1, density)
    W_hat = jax.random.uniform(k2, (reservoir_size, reservoir_size)) * 2.0 - 1.0
    mask = (jax.random.uniform(k3, (reservoir_size, reservoir_size)) <= density)
    W_hat = W_hat * mask.astype(W_hat.dtype)

    # TODO(synk): spectral-radius rescale (torch .eig) has no Pallas/TPU
    # equivalent; done host-side with numpy at init time (not part of forward).
    W_hat_np = np.asarray(jax.device_get(W_hat), dtype=np.float64)
    spectral_radius = np.max(np.abs(np.linalg.eigvals(W_hat_np)))
    W_hat = W_hat * (contractivity_coeff / np.float32(spectral_radius))

    return W_in.astype(jnp.float32), W_hat.astype(jnp.float32)


# ---------------------------------------------------------------------------
# References for validation
# ---------------------------------------------------------------------------
def reservoir_reference_f32(inputs, W_in, W_hat, initial_state=None):
    """Pure-JAX float32 reference mirroring the PyTorch forward loop."""
    R = W_in.shape[0]
    x = (jnp.zeros((R,), jnp.float32) if initial_state is None
         else jnp.asarray(initial_state, jnp.float32))
    outs = []
    for t in range(inputs.shape[0]):
        x = jax.nn.relu(W_in @ inputs[t] + W_hat @ x)
        outs.append(x)
    return jnp.stack(outs, axis=0)


def _round_f32_to_bf16(x):
    """float32 -> bfloat16 -> float32 (round-to-nearest-even), NumPy only."""
    b = np.asarray(x, np.float32).view(np.uint32).astype(np.uint64)
    b = (b + np.uint64(0x7FFF) + ((b >> np.uint64(16)) & np.uint64(1))) \
        & np.uint64(0xFFFF0000)
    return b.astype(np.uint32).view(np.float32)


def reservoir_reference_bf16(inputs, W_in, W_hat, initial_state=None):
    """NumPy reference mimicking the kernel's bf16-weight / f32-accum precision."""
    u = _round_f32_to_bf16(np.asarray(inputs, np.float32)).astype(np.float64)
    Wi = _round_f32_to_bf16(np.asarray(W_in, np.float32)).astype(np.float64)
    Wh = _round_f32_to_bf16(np.asarray(W_hat, np.float32)).astype(np.float64)
    R = Wi.shape[0]
    x = (np.zeros((R,), np.float64) if initial_state is None
         else np.asarray(initial_state, np.float64))
    uproj = u @ Wi.T
    outs = []
    for t in range(u.shape[0]):
        xq = _round_f32_to_bf16(x.astype(np.float32)).astype(np.float64)
        x = np.maximum(uproj[t] + Wh @ xq, 0.0)
        outs.append(x)
    return np.stack(outs, axis=0).astype(np.float32)


if __name__ == "__main__":
    input_size, reservoir_size = 32, 128
    key = jax.random.PRNGKey(0)
    k_params, k_u1, k_u2, k_x0 = jax.random.split(key, 4)

    W_in, W_hat = make_reservoir_params(
        k_params, input_size, reservoir_size,
        contractivity_coeff=0.9, density=0.8, scale_in=1.0)

    # Case 1: tiny sequence, float32 weights, zero initial state.
    seq1 = 8
    u1 = jax.random.normal(k_u1, (seq1, input_size), dtype=jnp.float32)
    out1 = jax.block_until_ready(
        reservoir_forward(u1, W_in, W_hat, weight_dtype=jnp.float32))
    assert out1.shape == (seq1, reservoir_size)
    ref1 = reservoir_reference_f32(u1, W_in, W_hat)
    np.testing.assert_allclose(np.asarray(out1), np.asarray(ref1),
                               rtol=2e-3, atol=2e-3)

    # Case 2: longer sequence spanning several T-blocks (with trailing
    # padding), default bf16 weights, explicit initial state.
    seq2 = 100
    u2 = jax.random.normal(k_u2, (seq2, input_size), dtype=jnp.float32)
    x0 = 0.1 * jax.random.normal(k_x0, (reservoir_size,), dtype=jnp.float32)
    out2 = jax.block_until_ready(
        reservoir_forward(u2, W_in, W_hat, initial_state=x0, t_block=64))
    assert out2.shape == (seq2, reservoir_size)
    ref2 = reservoir_reference_bf16(u2, W_in, W_hat, initial_state=x0)
    np.testing.assert_allclose(np.asarray(out2), np.asarray(ref2),
                               rtol=2e-2, atol=2e-2)

    print("KERNEL_OK")
</pallas_src>

<mosaic_0001>
module attributes {stable_mosaic.version = 11 : i64} {
  func.func @kernel(%arg0: i32, %arg1: memref<8x32xf32, #tpu.memory_space<vmem>>, %arg2: memref<32x128xf32, #tpu.memory_space<vmem>>, %arg3: memref<128x128xf32, #tpu.memory_space<vmem>>, %arg4: memref<8x128xf32, #tpu.memory_space<vmem>>, %arg5: memref<1x128xf32, #tpu.memory_space<vmem>>) attributes {dimension_semantics = [#tpu.dimension_semantics<arbitrary>], iteration_bounds = array<i64: 1>, scalar_prefetch = 0 : i64, scratch_operands = 1 : i64, tpu.core_type = #tpu.core_type<tc>, window_params = [{transform_indices = @transform_0, window_bounds = array<i64: 8, 32>}, {pipeline_mode = #tpu.pipeline_mode<synchronous>, transform_indices = @transform_1, window_bounds = array<i64: 32, 128>}, {pipeline_mode = #tpu.pipeline_mode<synchronous>, transform_indices = @transform_2, window_bounds = array<i64: 128, 128>}, {transform_indices = @transform_3, window_bounds = array<i64: 8, 128>}]} {
    %c0_i32 = arith.constant 0 : i32
    %0 = arith.cmpi eq, %arg0, %c0_i32 : i32
    %1 = arith.extui %0 : i1 to i32
    %c0_i32_0 = arith.constant 0 : i32
    %2 = arith.cmpi ne, %1, %c0_i32_0 : i32
    scf.if %2 {
      %cst_45 = arith.constant 0.000000e+00 : f32
      %74 = vector.broadcast %cst_45 : f32 to vector<1x128xf32>
      %c0_46 = arith.constant 0 : index
      %c0_47 = arith.constant 0 : index
      %75 = vector.load %arg5[%c0_46, %c0_47] : memref<1x128xf32, #tpu.memory_space<vmem>>, vector<1x128xf32>
      tpu.vector_store %arg5[%c0_46, %c0_47], %74 {strides = array<i32>} : memref<1x128xf32, #tpu.memory_space<vmem>>, vector<1x128xf32>,
    } else {
    }
    %c0 = arith.constant 0 : index
    %c0_1 = arith.constant 0 : index
    %3 = vector.load %arg1[%c0, %c0_1] : memref<8x32xf32, #tpu.memory_space<vmem>>, vector<8x32xf32>
    %c0_2 = arith.constant 0 : index
    %c0_3 = arith.constant 0 : index
    %4 = vector.load %arg2[%c0_2, %c0_3] : memref<32x128xf32, #tpu.memory_space<vmem>>, vector<32x128xf32>
    %cst = arith.constant dense<0.000000e+00> : vector<8x128xf32>
    %5 = tpu.matmul %3, %4, %cst {dimension_numbers = #tpu.dot_dimension_numbers<[1], [0], [0], [1], [0, 0, 1, 1], [], []>} : vector<8x32xf32>, vector<32x128xf32>, vector<8x128xf32> -> vector<8x128xf32>
    %c0_4 = arith.constant 0 : index
    %c0_5 = arith.constant 0 : index
    %6 = vector.load %arg4[%c0_4, %c0_5] : memref<8x128xf32, #tpu.memory_space<vmem>>, vector<8x128xf32>
    tpu.vector_store %arg4[%c0_4, %c0_5], %5 {strides = array<i32>} : memref<8x128xf32, #tpu.memory_space<vmem>>, vector<8x128xf32>,
    %c0_6 = arith.constant 0 : index
    %c0_7 = arith.constant 0 : index
    %7 = vector.load %arg3[%c0_6, %c0_7] : memref<128x128xf32, #tpu.memory_space<vmem>>, vector<128x128xf32>
    %c0_8 = arith.constant 0 : index
    %c0_9 = arith.constant 0 : index
    %8 = vector.load %arg5[%c0_8, %c0_9] : memref<1x128xf32, #tpu.memory_space<vmem>>, vector<1x128xf32>
    %c0_i32_10 = arith.constant 0 : i32
    %9 = arith.index_cast %c0_i32_10 : i32 to index
    %c0_11 = arith.constant 0 : index
    %10 = vector.load %arg4[%9, %c0_11] : memref<8x128xf32, #tpu.memory_space<vmem>>, vector<1x128xf32>
    %cst_12 = arith.constant dense<0.000000e+00> : vector<1x128xf32>
    %11 = tpu.matmul %8, %7, %cst_12 {dimension_numbers = #tpu.dot_dimension_numbers<[1], [0], [0], [1], [0, 0, 1, 1], [], []>} : vector<1x128xf32>, vector<128x128xf32>, vector<1x128xf32> -> vector<1x128xf32>
    %12 = arith.addf %10, %11 : vector<1x128xf32>
    %cst_13 = arith.constant 0.000000e+00 : f32
    %13 = vector.broadcast %cst_13 : f32 to vector<1x128xf32>
    %14 = arith.maximumf %12, %13 : vector<1x128xf32>
    %15 = arith.index_cast %c0_i32_10 : i32 to index
    %c0_14 = arith.constant 0 : index
    %16 = vector.load %arg4[%15, %c0_14] : memref<8x128xf32, #tpu.memory_space<vmem>>, vector<1x128xf32>
    tpu.vector_store %arg4[%15, %c0_14], %14 {strides = array<i32>} : memref<8x128xf32, #tpu.memory_space<vmem>>, vector<1x128xf32>,
    %c1_i32 = arith.constant 1 : i32
    %17 = arith.index_cast %c1_i32 : i32 to index
    %c0_15 = arith.constant 0 : index
    %18 = vector.load %arg4[%17, %c0_15] : memref<8x128xf32, #tpu.memory_space<vmem>>, vector<1x128xf32>
    %cst_16 = arith.constant dense<0.000000e+00> : vector<1x128xf32>
    %19 = tpu.matmul %14, %7, %cst_16 {dimension_numbers = #tpu.dot_dimension_numbers<[1], [0], [0], [1], [0, 0, 1, 1], [], []>} : vector<1x128xf32>, vector<128x128xf32>, vector<1x128xf32> -> vector<1x128xf32>
    %20 = arith.addf %18, %19 : vector<1x128xf32>
    %cst_17 = arith.constant 0.000000e+00 : f32
    %21 = vector.broadcast %cst_17 : f32 to vector<1x128xf32>
    %22 = arith.maximumf %20, %21 : vector<1x128xf32>
    %23 = arith.index_cast %c1_i32 : i32 to index
    %c0_18 = arith.constant 0 : index
    %24 = vector.load %arg4[%23, %c0_18] : memref<8x128xf32, #tpu.memory_space<vmem>>, vector<1x128xf32>
    tpu.vector_store %arg4[%23, %c0_18], %22 {strides = array<i32>} : memref<8x128xf32, #tpu.memory_space<vmem>>, vector<1x128xf32>,
    %c2_i32 = arith.constant 2 : i32
    %25 = arith.index_cast %c2_i32 : i32 to index
    %c0_19 = arith.constant 0 : index
    %26 = vector.load %arg4[%25, %c0_19] : memref<8x128xf32, #tpu.memory_space<vmem>>, vector<1x128xf32>
    %cst_20 = arith.constant dense<0.000000e+00> : vector<1x128xf32>
    %27 = tpu.matmul %22, %7, %cst_20 {dimension_numbers = #tpu.dot_dimension_numbers<[1], [0], [0], [1], [0, 0, 1, 1], [], []>} : vector<1x128xf32>, vector<128x128xf32>, vector<1x128xf32> -> vector<1x128xf32>
    %28 = arith.addf %26, %27 : vector<1x128xf32>
    %cst_21 = arith.constant 0.000000e+00 : f32
    %29 = vector.broadcast %cst_21 : f32 to vector<1x128xf32>
    %30 = arith.maximumf %28, %29 : vector<1x128xf32>
    %31 = arith.index_cast %c2_i32 : i32 to index
    %c0_22 = arith.constant 0 : index
    %32 = vector.load %arg4[%31, %c0_22] : memref<8x128xf32, #tpu.memory_space<vmem>>, vector<1x128xf32>
    tpu.vector_store %arg4[%31, %c0_22], %30 {strides = array<i32>} : memref<8x128xf32, #tpu.memory_space<vmem>>, vector<1x128xf32>,
    %c3_i32 = arith.constant 3 : i32
    %33 = arith.index_cast %c3_i32 : i32 to index
    %c0_23 = arith.constant 0 : index
    %34 = vector.load %arg4[%33, %c0_23] : memref<8x128xf32, #tpu.memory_space<vmem>>, vector<1x128xf32>
    %cst_24 = arith.constant dense<0.000000e+00> : vector<1x128xf32>
    %35 = tpu.matmul %30, %7, %cst_24 {dimension_numbers = #tpu.dot_dimension_numbers<[1], [0], [0], [1], [0, 0, 1, 1], [], []>} : vector<1x128xf32>, vector<128x128xf32>, vector<1x128xf32> -> vector<1x128xf32>
    %36 = arith.addf %34, %35 : vector<1x128xf32>
    %cst_25 = arith.constant 0.000000e+00 : f32
    %37 = vector.broadcast %cst_25 : f32 to vector<1x128xf32>
    %38 = arith.maximumf %36, %37 : vector<1x128xf32>
    %39 = arith.index_cast %c3_i32 : i32 to index
    %c0_26 = arith.constant 0 : index
    %40 = vector.load %arg4[%39, %c0_26] : memref<8x128xf32, #tpu.memory_space<vmem>>, vector<1x128xf32>
    tpu.vector_store %arg4[%39, %c0_26], %38 {strides = array<i32>} : memref<8x128xf32, #tpu.memory_space<vmem>>, vector<1x128xf32>,
    %c4_i32 = arith.constant 4 : i32
    %41 = arith.index_cast %c4_i32 : i32 to index
    %c0_27 = arith.constant 0 : index
    %42 = vector.load %arg4[%41, %c0_27] : memref<8x128xf32, #tpu.memory_space<vmem>>, vector<1x128xf32>
    %cst_28 = arith.constant dense<0.000000e+00> : vector<1x128xf32>
    %43 = tpu.matmul %38, %7, %cst_28 {dimension_numbers = #tpu.dot_dimension_numbers<[1], [0], [0], [1], [0, 0, 1, 1], [], []>} : vector<1x128xf32>, vector<128x128xf32>, vector<1x128xf32> -> vector<1x128xf32>
    %44 = arith.addf %42, %43 : vector<1x128xf32>
    %cst_29 = arith.constant 0.000000e+00 : f32
    %45 = vector.broadcast %cst_29 : f32 to vector<1x128xf32>
    %46 = arith.maximumf %44, %45 : vector<1x128xf32>
    %47 = arith.index_cast %c4_i32 : i32 to index
    %c0_30 = arith.constant 0 : index
    %48 = vector.load %arg4[%47, %c0_30] : memref<8x128xf32, #tpu.memory_space<vmem>>, vector<1x128xf32>
    tpu.vector_store %arg4[%47, %c0_30], %46 {strides = array<i32>} : memref<8x128xf32, #tpu.memory_space<vmem>>, vector<1x128xf32>,
    %c5_i32 = arith.constant 5 : i32
    %49 = arith.index_cast %c5_i32 : i32 to index
    %c0_31 = arith.constant 0 : index
    %50 = vector.load %arg4[%49, %c0_31] : memref<8x128xf32, #tpu.memory_space<vmem>>, vector<1x128xf32>
    %cst_32 = arith.constant dense<0.000000e+00> : vector<1x128xf32>
    %51 = tpu.matmul %46, %7, %cst_32 {dimension_numbers = #tpu.dot_dimension_numbers<[1], [0], [0], [1], [0, 0, 1, 1], [], []>} : vector<1x128xf32>, vector<128x128xf32>, vector<1x128xf32> -> vector<1x128xf32>
    %52 = arith.addf %50, %51 : vector<1x128xf32>
    %cst_33 = arith.constant 0.000000e+00 : f32
    %53 = vector.broadcast %cst_33 : f32 to vector<1x128xf32>
    %54 = arith.maximumf %52, %53 : vector<1x128xf32>
    %55 = arith.index_cast %c5_i32 : i32 to index
    %c0_34 = arith.constant 0 : index
    %56 = vector.load %arg4[%55, %c0_34] : memref<8x128xf32, #tpu.memory_space<vmem>>, vector<1x128xf32>
    tpu.vector_store %arg4[%55, %c0_34], %54 {strides = array<i32>} : memref<8x128xf32, #tpu.memory_space<vmem>>, vector<1x128xf32>,
    %c6_i32 = arith.constant 6 : i32
    %57 = arith.index_cast %c6_i32 : i32 to index
    %c0_35 = arith.constant 0 : index
    %58 = vector.load %arg4[%57, %c0_35] : memref<8x128xf32, #tpu.memory_space<vmem>>, vector<1x128xf32>
    %cst_36 = arith.constant dense<0.000000e+00> : vector<1x128xf32>
    %59 = tpu.matmul %54, %7, %cst_36 {dimension_numbers = #tpu.dot_dimension_numbers<[1], [0], [0], [1], [0, 0, 1, 1], [], []>} : vector<1x128xf32>, vector<128x128xf32>, vector<1x128xf32> -> vector<1x128xf32>
    %60 = arith.addf %58, %59 : vector<1x128xf32>
    %cst_37 = arith.constant 0.000000e+00 : f32
    %61 = vector.broadcast %cst_37 : f32 to vector<1x128xf32>
    %62 = arith.maximumf %60, %61 : vector<1x128xf32>
    %63 = arith.index_cast %c6_i32 : i32 to index
    %c0_38 = arith.constant 0 : index
    %64 = vector.load %arg4[%63, %c0_38] : memref<8x128xf32, #tpu.memory_space<vmem>>, vector<1x128xf32>
    tpu.vector_store %arg4[%63, %c0_38], %62 {strides = array<i32>} : memref<8x128xf32, #tpu.memory_space<vmem>>, vector<1x128xf32>,
    %c7_i32 = arith.constant 7 : i32
    %65 = arith.index_cast %c7_i32 : i32 to index
    %c0_39 = arith.constant 0 : index
    %66 = vector.load %arg4[%65, %c0_39] : memref<8x128xf32, #tpu.memory_space<vmem>>, vector<1x128xf32>
    %cst_40 = arith.constant dense<0.000000e+00> : vector<1x128xf32>
    %67 = tpu.matmul %62, %7, %cst_40 {dimension_numbers = #tpu.dot_dimension_numbers<[1], [0], [0], [1], [0, 0, 1, 1], [], []>} : vector<1x128xf32>, vector<128x128xf32>, vector<1x128xf32> -> vector<1x128xf32>
    %68 = arith.addf %66, %67 : vector<1x128xf32>
    %cst_41 = arith.constant 0.000000e+00 : f32
    %69 = vector.broadcast %cst_41 : f32 to vector<1x128xf32>
    %70 = arith.maximumf %68, %69 : vector<1x128xf32>
    %71 = arith.index_cast %c7_i32 : i32 to index
    %c0_42 = arith.constant 0 : index
    %72 = vector.load %arg4[%71, %c0_42] : memref<8x128xf32, #tpu.memory_space<vmem>>, vector<1x128xf32>
    tpu.vector_store %arg4[%71, %c0_42], %70 {strides = array<i32>} : memref<8x128xf32, #tpu.memory_space<vmem>>, vector<1x128xf32>,
    %c8_i32 = arith.constant 8 : i32
    %c0_43 = arith.constant 0 : index
    %c0_44 = arith.constant 0 : index
    %73 = vector.load %arg5[%c0_43, %c0_44] : memref<1x128xf32, #tpu.memory_space<vmem>>, vector<1x128xf32>
    tpu.vector_store %arg5[%c0_43, %c0_44], %70 {strides = array<i32>} : memref<1x128xf32, #tpu.memory_space<vmem>>, vector<1x128xf32>,
    return
  }
  func.func @transform_0(%arg0: i32) -> (i32, i32) {
    %c0_i32 = arith.constant 0 : i32
    %c0_i32_0 = arith.constant 0 : i32
    return %arg0, %c0_i32 : i32, i32
  }
  func.func @transform_1(%arg0: i32) -> (i32, i32) {
    %c0_i32 = arith.constant 0 : i32
    %c0_i32_0 = arith.constant 0 : i32
    %c0_i32_1 = arith.constant 0 : i32
    return %c0_i32, %c0_i32_0 : i32, i32
  }
  func.func @transform_2(%arg0: i32) -> (i32, i32) {
    %c0_i32 = arith.constant 0 : i32
    %c0_i32_0 = arith.constant 0 : i32
    %c0_i32_1 = arith.constant 0 : i32
    return %c0_i32, %c0_i32_0 : i32, i32
  }
  func.func @transform_3(%arg0: i32) -> (i32, i32) {
    %c0_i32 = arith.constant 0 : i32
    %c0_i32_0 = arith.constant 0 : i32
    return %arg0, %c0_i32 : i32, i32
  }
}

</mosaic_0001>

<bundles_post_ra>
// kernel: tpu_custom_call.1
= control target key start
LH: loop header
LB: loop body
LE: loop exit
PB: predicated region body
PF: predicated region fallthrough
CT: control target
= control target key end

     0   :  { %8 = vsyncpa [#allocation4], 0  ;;  %s1747_s0 = inlined_call_operand.hbm [shape: f32[8,32], index: 0, kind: input, shape index: {}]   ;;  %s1748_s1 = inlined_call_operand.hbm [shape: f32[32,128], index: 1, kind: input, shape index: {}]   ;;  %s1749_s2 = inlined_call_operand.hbm [shape: f32[128,128], index: 2, kind: input, shape index: {}]   ;;  %s1750_s3 = inlined_call_operand.hbm [shape: f32[8,128], index: 3, kind: output, shape index: {}]  }
   0x1   :  { %9 = vsyncpa [#allocation7], 0 }
   0x2   :  { %10 = vsyncpa [#allocation5], 0  ;;  %s1499_s12 = smov [#allocation6]   ;;  %s1405_s16 = scalar_lea.hbm %s1748_s1, 512 }
   0x3   :  { %s26_s13 = sshll.u32 %s1499_s12, 4  ;;  %p1406_p0 = scmp.ne.s32.totalorder %s1748_s1, %s1405_s16  ;;  %s27_s13 = int_to_ptr.vmem [resolvable:$true] %s26_s13 }
   0x4   :  { %p1409_p1 = scmp.lt.u32.totalorder %s1405_s16, %s1748_s1 }
   0x6   :  { %p1411_p2 = pnand %p1409_p1, %p1406_p0 }
   0x8   :  { %1414 = shalt.err (!%p1411_p2)
}
   0x9   :  { %s1415_s21 = scalar_lea.vmem %s27_s13, 512  ;;  %p1420_p4 = scmp.lt.s32.totalorder %s27_s13, %s27_s13 }
   0xa   :  { %p1416_p3 = scmp.ne.s32.totalorder %s27_s13, %s1415_s21  ;;  %p1421_p5 = scmp.lt.s32.totalorder %s1415_s21, %s1415_s21 }
   0xc   :  { %p1422_p6 = por %p1421_p5, %p1420_p4 }
   0xe   :  { %p1423_p7 = pnand %p1422_p6, %p1416_p3 }
  0x10   :  { %1426 = shalt.err (!%p1423_p7)
}
  0x11   :  { %s1500_s22 = smov 128   ;;  %s1501_s23 = smov 8  }
  0x12   :  { %32 = dma.hbm_to_vmem [thread:$0]  %s1748_s1, 512, %s27_s13, [#allocation7], %s1500_s22, %s1500_s22, %s1501_s23  }
  0x13   :  { %s1502_s26 = smov [#allocation3]   ;;  %s1503_s28 = smov [#allocation8]  }
  0x14   :  { %s17_s27 = sshll.u32 %s1502_s26, 4  ;;  %s38_s29 = sshll.u32 %s1503_s28, 4  ;;  %s18_s27 = int_to_ptr.vmem [resolvable:$true] %s17_s27  ;;  %s39_s29 = int_to_ptr.vmem [resolvable:$true] %s38_s29 }
  0x15   :  { %s1427_s5 = scalar_lea.hbm %s1747_s0, 128 }
  0x16   :  { %p1428_p8 = scmp.ne.s32.totalorder %s1747_s0, %s1427_s5  ;;  %p1431_p9 = scmp.lt.u32.totalorder %s1427_s5, %s1747_s0 }
  0x18   :  { %p1433_p10 = pnand %p1431_p9, %p1428_p8 }
  0x1a   :  { %1436 = shalt.err (!%p1433_p10)
}
  0x1b   :  { %s1437_s1 = scalar_lea.vmem %s18_s27, 128  ;;  %p1442_p12 = scmp.lt.s32.totalorder %s18_s27, %s18_s27 }
  0x1c   :  { %p1438_p11 = scmp.ne.s32.totalorder %s18_s27, %s1437_s1  ;;  %p1443_p13 = scmp.lt.s32.totalorder %s1437_s1, %s1437_s1 }
  0x1e   :  { %p1444_p0 = por %p1443_p13, %p1442_p12 }
  0x20   :  { %p1445_p1 = pnand %p1444_p0, %p1438_p11 }
  0x22   :  { %1448 = shalt.err (!%p1445_p1)
}
  0x23   :  { %20 = dma.hbm_to_vmem [thread:$0]  %s1747_s0, 128, %s18_s27, [#allocation4]  }
  0x24   :  { %s1449_s14 = scalar_lea.hbm %s1749_s2, 2048 }
  0x25   :  { %p1450_p2 = scmp.ne.s32.totalorder %s1749_s2, %s1449_s14  ;;  %p1453_p3 = scmp.lt.u32.totalorder %s1449_s14, %s1749_s2 }
  0x27   :  { %p1455_p4 = pnand %p1453_p3, %p1450_p2 }
  0x29   :  { %1458 = shalt.err (!%p1455_p4)
}
  0x2a   :  { %s1459_s19 = scalar_lea.vmem %s39_s29, 2048  ;;  %p1464_p6 = scmp.lt.s32.totalorder %s39_s29, %s39_s29 }
  0x2b   :  { %p1460_p5 = scmp.ne.s32.totalorder %s39_s29, %s1459_s19  ;;  %p1465_p7 = scmp.lt.s32.totalorder %s1459_s19, %s1459_s19 }
  0x2d   :  { %p1466_p8 = por %p1465_p7, %p1464_p6 }
  0x2f   :  { %p1467_p9 = pnand %p1466_p8, %p1460_p5 }
  0x31   :  { %1470 = shalt.err (!%p1467_p9)
}
  0x32   :  { %44 = dma.hbm_to_vmem [thread:$0]  %s1749_s2, 2048, %s39_s29, [#allocation7], %s1500_s22, %s1500_s22, %s1501_s23  }
  0x33   :  { %1493 = dma.done.wait [#allocation4], 128  }
  0x34   :  { %1494 = vsyncadd [#allocation4], 4294967168 }
  0x35   :  { %1495 = dma.done.wait [#allocation7], 2560  }
  0x36   :  { %1496 = vsyncadd [#allocation7], 4294964736  ;;  %v1504_v0 = vmov 0.0|0.0   ;;  %v1505_v1 = vmov 0.0   ;;  %vm1506_vm0 = vmmov 0   ;;  %v139_v2 = vld [vmem:[#allocation8] sm:$0xff] }
  0x37   :  { %1204 = vmatprep.subr.bf16.mxu1 %v1504_v0  ;;  %1198 = vmatprep.subr.bf16.mxu0 %v1504_v0  ;;  %58 = vst [vmem:[#allocation2] sm:$0x1] %v1505_v1  ;;  %v140_v3 = vld [vmem:[#allocation8 + $0x8] sm:$0xff]  ;;  %v141_v4 = vld [vmem:[#allocation8 + $0x10] sm:$0xff]  ;;  %v142_v6 = vld [vmem:[#allocation8 + $0x18] sm:$0xff]  ;;  %vm64_vm1 = vcmask 261120  }
  0x38   :  { %915 = vmatprep.mubr.msk.f32.mxu0 %vm1506_vm0, %v1505_v1  ;;  %950 = vmatprep.mubr.msk.f32.mxu1 %vm1506_vm0, %v1505_v1  ;;  %v1577_v5 = vpack.c.bf16 %v140_v3, %v139_v2  ;;  %v60_v7 = vld [vmem:[#allocation6] sm:$0xff]  ;;  %v1580_v8 = vpack.c.bf16 %v142_v6, %v141_v4  ;;  %v61_v10 = vld [vmem:[#allocation6 + $0x8] sm:$0xff]  ;;  %v62_v13 = vld [vmem:[#allocation6 + $0x10] sm:$0xff]  ;;  %s1507_s2 = smov [#allocation9]  }
  0x39   :  { %v143_v9 = vld [vmem:[#allocation8 + $0x20] sm:$0xff]  ;;  %v144_v11 = vld [vmem:[#allocation8 + $0x28] sm:$0xff]  ;;  %v1199_v12 = vpack.c.bf16 %v61_v10, %v60_v7  ;;  %v63_v14 = vld [vmem:[#allocation6 + $0x18] sm:$0xff]  ;;  %s755_s21 = sshll.u32 %s1507_s2, 4  ;;  %s756_s21 = int_to_ptr.vmem [resolvable:$true] %s755_s21 }
  0x3a   :  { %1206 = vmatpush3.bf16.msra.mxu1 %v1577_v5  ;;  %v1202_v15 = vpack.c.bf16 %v63_v14, %v62_v13  ;;  %v1584_v16 = vpack.c.bf16 %v144_v11, %v143_v9  ;;  %v145_v17 = vld [vmem:[#allocation8 + $0x30] sm:$0xff]  ;;  %v146_v18 = vld [vmem:[#allocation8 + $0x38] sm:$0xff]  ;;  %v147_v21 = vld [vmem:[#allocation8 + $0x40] sm:$0xff]  ;;  %s1471_s22 = scalar_lea.vmem %s756_s21, 128  ;;  %p1476_p11 = scmp.lt.s32.totalorder %s756_s21, %s756_s21 }
  0x3b   :  { %1207 = vmatprep.subr.bf16.mxu1 %v1504_v0  ;;  %1200 = vmatpush3.bf16.msra.mxu0 %v1199_v12  ;;  %v59_v19 = vld [vmem:[#allocation3] sm:$0xff]  ;;  %v1589_v20 = vpack.c.bf16 %v146_v18, %v145_v17  ;;  %v148_v22 = vld [vmem:[#allocation8 + $0x48] sm:$0xff]  ;;  %v149_v24 = vld [vmem:[#allocation8 + $0x50] sm:$0xff]  ;;  %p1472_p10 = scmp.ne.s32.totalorder %s756_s21, %s1471_s22  ;;  %p1477_p12 = scmp.lt.s32.totalorder %s1471_s22, %s1471_s22 }
  0x3c   :  { %1201 = vmatprep.subr.bf16.mxu0 %v1504_v0  ;;  %v1597_v23 = vpack.c.bf16 %v148_v22, %v147_v21  ;;  %v150_v25 = vld [vmem:[#allocation8 + $0x58] sm:$0xff]  ;;  %v151_v27 = vld [vmem:[#allocation8 + $0x60] sm:$0xff]  ;;  %v152_v28 = vld [vmem:[#allocation8 + $0x68] sm:$0xff] }
  0x3d   :  { %v1603_v26 = vpack.c.bf16 %v150_v25, %v149_v24  ;;  %v1609_v29 = vpack.c.bf16 %v152_v28, %v151_v27  ;;  %v153_v30 = vld [vmem:[#allocation8 + $0x70] sm:$0xff]  ;;  %v154_v31 = vld [vmem:[#allocation8 + $0x78] sm:$0xff]  ;;  %p1478_p13 = por %p1477_p12, %p1476_p11 }
  0x3e   :  { %1209 = vmatpush3.bf16.msra.mxu1 %v1580_v8  ;;  %v1615_v32 = vpack.c.bf16 %v154_v31, %v153_v30  ;;  %v155_v33 = vld [vmem:[#allocation2] sm:$0x1] }
  0x3f   :  { %1210 = vmatprep.subr.bf16.mxu1 %v1504_v0  ;;  %1203 = vmatpush3.bf16.msra.mxu0 %v1202_v15  ;;  %p1479_p0 = pnand %p1478_p13, %p1472_p10 }
  0x40   :  { %1228 = vmatprep.subr.bf16.mxu0 %v1504_v0 }
  0x42   :  { %1212 = vmatpush3.bf16.msra.mxu1 %v1584_v16  ;;  %916 = vmatmul.mubr.msk.f32.vlgmr.msra.gmra.mrb[0].mxu0 %vm64_vm1, %v59_v19 }
  0x43   :  { %1213 = vmatprep.subr.bf16.mxu1 %v1504_v0  ;;  %1230 = vmatpush3.bf16.msra.mxu0 %v1577_v5 }
  0x44   :  { %985 = vmatprep.mubr.msk.f32.mxu0 %vm1506_vm0, %v1505_v1  ;;  %1231 = vmatprep.subr.bf16.mxu0 %v1504_v0 }
  0x46   :  { %1215 = vmatpush3.bf16.msra.mxu1 %v1589_v20 }
  0x47   :  { %1216 = vmatprep.subr.bf16.mxu1 %v1504_v0  ;;  %1233 = vmatpush3.bf16.msra.mxu0 %v1580_v8 }
  0x48   :  { %1234 = vmatprep.subr.bf16.mxu0 %v1504_v0 }
  0x4a   :  { %1218 = vmatpush3.bf16.msra.mxu1 %v1597_v23 }
  0x4b   :  { %1219 = vmatprep.subr.bf16.mxu1 %v1504_v0  ;;  %1236 = vmatpush3.bf16.msra.mxu0 %v1584_v16 }
  0x4c   :  { %1237 = vmatprep.subr.bf16.mxu0 %v1504_v0 }
  0x4e   :  { %1221 = vmatpush3.bf16.msra.mxu1 %v1603_v26 }
  0x4f   :  { %1222 = vmatprep.subr.bf16.mxu1 %v1504_v0  ;;  %1239 = vmatpush3.bf16.msra.mxu0 %v1589_v20 }
  0x50   :  { %1240 = vmatprep.subr.bf16.mxu0 %v1504_v0 }
  0x52   :  { %1224 = vmatpush3.bf16.msra.mxu1 %v1609_v29 }
  0x53   :  { %1225 = vmatprep.subr.bf16.mxu1 %v1504_v0  ;;  %1242 = vmatpush3.bf16.msra.mxu0 %v1597_v23 }
  0x54   :  { %1243 = vmatprep.subr.bf16.mxu0 %v1504_v0 }
  0x56   :  { %1227 = vmatpush3.bf16.msra.mxu1 %v1615_v32 }
  0x57   :  { %1252 = vmatprep.subr.bf16.mxu1 %v1504_v0  ;;  %1245 = vmatpush3.bf16.msra.mxu0 %v1603_v26 }
  0x58   :  { %1246 = vmatprep.subr.bf16.mxu0 %v1504_v0 }
  0x59   :  { %951 = vmatmul.mubr.f32.vlgmr.msra.gmra.mrb[0].mxu1 %v155_v33 }
  0x5a   :  { %1254 = vmatpush3.bf16.msra.mxu1 %v1577_v5  ;;  %1020 = vmatprep.mubr.msk.f32.mxu1 %vm1506_vm0, %v1505_v1 }
  0x5b   :  { %1255 = vmatprep.subr.bf16.mxu1 %v1504_v0  ;;  %1248 = vmatpush3.bf16.msra.mxu0 %v1609_v29 }
  0x5c   :  { %1249 = vmatprep.subr.bf16.mxu0 %v1504_v0 }
  0x5e   :  { %1257 = vmatpush3.bf16.msra.mxu1 %v1580_v8 }
  0x5f   :  { %1258 = vmatprep.subr.bf16.mxu1 %v1504_v0  ;;  %1251 = vmatpush3.bf16.msra.mxu0 %v1615_v32 }
  0x60   :  { %1276 = vmatprep.subr.bf16.mxu0 %v1504_v0 }
  0x62   :  { %1260 = vmatpush3.bf16.msra.mxu1 %v1584_v16 }
  0x63   :  { %1261 = vmatprep.subr.bf16.mxu1 %v1504_v0 }
  0x66   :  { %1263 = vmatpush3.bf16.msra.mxu1 %v1589_v20 }
  0x67   :  { %1264 = vmatprep.subr.bf16.mxu1 %v1504_v0 }
  0x6a   :  { %1266 = vmatpush3.bf16.msra.mxu1 %v1597_v23 }
  0x6b   :  { %1267 = vmatprep.subr.bf16.mxu1 %v1504_v0 }
  0x6e   :  { %1269 = vmatpush3.bf16.msra.mxu1 %v1603_v26 }
  0x6f   :  { %1270 = vmatprep.subr.bf16.mxu1 %v1504_v0 }
  0x72   :  { %1272 = vmatpush3.bf16.msra.mxu1 %v1609_v29 }
  0x73   :  { %1273 = vmatprep.subr.bf16.mxu1 %v1504_v0 }
  0x76   :  { %1275 = vmatpush3.bf16.msra.mxu1 %v1615_v32 }
  0x77   :  { %1300 = vmatprep.subr.bf16.mxu1 %v1504_v0 }
 0x115   :  { %v134_v34 = vpop.f32.mrb[0].mxu0 }
 0x116   :  { %138 = vst [vmem:[#allocation9] sm:$0xff] %v134_v34  ;;  %v917_v35 = vpop.f32.mrb[1].mxu0 }
 0x11d   :  { %v156_v36 = vld [vmem:[#allocation9] sm:$0x1]  ;;  %v230_v41 = vld [vmem:[#allocation9 + $0x1] sm:$0x1]  ;;  %v304_v46 = vld [vmem:[#allocation9 + $0x2] sm:$0x1] }
 0x11e   :  { %v378_v51 = vld [vmem:[#allocation9 + $0x3] sm:$0x1]  ;;  %v452_v56 = vld [vmem:[#allocation9 + $0x4] sm:$0x1]  ;;  %v526_v61 = vld [vmem:[#allocation9 + $0x5] sm:$0x1] }
 0x11f   :  { %v600_v3 = vld [vmem:[#allocation9 + $0x6] sm:$0x1] }
 0x12c   :  { %v223_v37 = vpop.f32.mrb[0].mxu1 }
 0x12d   :  { %v227_v38 = vadd.f32 %v223_v37, %v156_v36  ;;  %v952_v39 = vpop.f32.mrb[1].mxu1 }
 0x12f   :  { %v228_v40 = vmax.f32 %v227_v38, 0.0 }
 0x131   :  { %229 = vst [vmem:[#allocation9] sm:$0x1] %v228_v40  ;;  %986 = vmatmul.mubr.f32.vlgmr.msra.gmra.mrb[2].mxu0 %v228_v40 }
 0x132   :  { %1278 = vmatpush3.bf16.msra.mxu0 %v1577_v5  ;;  %1055 = vmatprep.mubr.msk.f32.mxu0 %vm1506_vm0, %v1505_v1 }
 0x133   :  { %1279 = vmatprep.subr.bf16.mxu0 %v1504_v0 }
 0x136   :  { %1281 = vmatpush3.bf16.msra.mxu0 %v1580_v8 }
 0x137   :  { %1282 = vmatprep.subr.bf16.mxu0 %v1504_v0 }
 0x13a   :  { %1284 = vmatpush3.bf16.msra.mxu0 %v1584_v16 }
 0x13b   :  { %1285 = vmatprep.subr.bf16.mxu0 %v1504_v0 }
 0x13e   :  { %1287 = vmatpush3.bf16.msra.mxu0 %v1589_v20 }
 0x13f   :  { %1288 = vmatprep.subr.bf16.mxu0 %v1504_v0 }
 0x142   :  { %1290 = vmatpush3.bf16.msra.mxu0 %v1597_v23 }
 0x143   :  { %1291 = vmatprep.subr.bf16.mxu0 %v1504_v0 }
 0x146   :  { %1293 = vmatpush3.bf16.msra.mxu0 %v1603_v26 }
 0x147   :  { %1294 = vmatprep.subr.bf16.mxu0 %v1504_v0 }
 0x14a   :  { %1296 = vmatpush3.bf16.msra.mxu0 %v1609_v29 }
 0x14b   :  { %1297 = vmatprep.subr.bf16.mxu0 %v1504_v0 }
 0x14e   :  { %1299 = vmatpush3.bf16.msra.mxu0 %v1615_v32 }
 0x14f   :  { %1324 = vmatprep.subr.bf16.mxu0 %v1504_v0 }
 0x204   :  { %v297_v42 = vpop.f32.mrb[2].mxu0 }
 0x205   :  { %v301_v43 = vadd.f32 %v297_v42, %v230_v41  ;;  %v987_v44 = vpop.f32.mrb[3].mxu0 }
 0x207   :  { %v302_v45 = vmax.f32 %v301_v43, 0.0 }
 0x209   :  { %303 = vst [vmem:[#allocation9 + $0x1] sm:$0x1] %v302_v45  ;;  %1021 = vmatmul.mubr.f32.vlgmr.msra.gmra.mrb[2].mxu1 %v302_v45 }
 0x20a   :  { %1302 = vmatpush3.bf16.msra.mxu1 %v1577_v5  ;;  %1090 = vmatprep.mubr.msk.f32.mxu1 %vm1506_vm0, %v1505_v1 }
 0x20b   :  { %1303 = vmatprep.subr.bf16.mxu1 %v1504_v0 }
 0x20e   :  { %1305 = vmatpush3.bf16.msra.mxu1 %v1580_v8 }
 0x20f   :  { %1306 = vmatprep.subr.bf16.mxu1 %v1504_v0 }
 0x212   :  { %1308 = vmatpush3.bf16.msra.mxu1 %v1584_v16 }
 0x213   :  { %1309 = vmatprep.subr.bf16.mxu1 %v1504_v0 }
 0x216   :  { %1311 = vmatpush3.bf16.msra.mxu1 %v1589_v20 }
 0x217   :  { %1312 = vmatprep.subr.bf16.mxu1 %v1504_v0 }
 0x21a   :  { %1314 = vmatpush3.bf16.msra.mxu1 %v1597_v23 }
 0x21b   :  { %1315 = vmatprep.subr.bf16.mxu1 %v1504_v0 }
 0x21e   :  { %1317 = vmatpush3.bf16.msra.mxu1 %v1603_v26 }
 0x21f   :  { %1318 = vmatprep.subr.bf16.mxu1 %v1504_v0 }
 0x222   :  { %1320 = vmatpush3.bf16.msra.mxu1 %v1609_v29 }
 0x223   :  { %1321 = vmatprep.subr.bf16.mxu1 %v1504_v0 }
 0x226   :  { %1323 = vmatpush3.bf16.msra.mxu1 %v1615_v32 }
 0x227   :  { %1348 = vmatprep.subr.bf16.mxu1 %v1504_v0 }
 0x2dc   :  { %v371_v47 = vpop.f32.mrb[2].mxu1 }
 0x2dd   :  { %v375_v48 = vadd.f32 %v371_v47, %v304_v46  ;;  %v1022_v49 = vpop.f32.mrb[3].mxu1 }
 0x2df   :  { %v376_v50 = vmax.f32 %v375_v48, 0.0 }
 0x2e1   :  { %377 = vst [vmem:[#allocation9 + $0x2] sm:$0x1] %v376_v50  ;;  %1056 = vmatmul.mubr.f32.vlgmr.msra.gmra.mrb[4].mxu0 %v376_v50 }
 0x2e2   :  { %1326 = vmatpush3.bf16.msra.mxu0 %v1577_v5  ;;  %1125 = vmatprep.mubr.msk.f32.mxu0 %vm1506_vm0, %v1505_v1 }
 0x2e3   :  { %1327 = vmatprep.subr.bf16.mxu0 %v1504_v0 }
 0x2e6   :  { %1329 = vmatpush3.bf16.msra.mxu0 %v1580_v8 }
 0x2e7   :  { %1330 = vmatprep.subr.bf16.mxu0 %v1504_v0 }
 0x2ea   :  { %1332 = vmatpush3.bf16.msra.mxu0 %v1584_v16 }
 0x2eb   :  { %1333 = vmatprep.subr.bf16.mxu0 %v1504_v0 }
 0x2ee   :  { %1335 = vmatpush3.bf16.msra.mxu0 %v1589_v20 }
 0x2ef   :  { %1336 = vmatprep.subr.bf16.mxu0 %v1504_v0 }
 0x2f2   :  { %1338 = vmatpush3.bf16.msra.mxu0 %v1597_v23 }
 0x2f3   :  { %1339 = vmatprep.subr.bf16.mxu0 %v1504_v0 }
 0x2f6   :  { %1341 = vmatpush3.bf16.msra.mxu0 %v1603_v26 }
 0x2f7   :  { %1342 = vmatprep.subr.bf16.mxu0 %v1504_v0 }
 0x2fa   :  { %1344 = vmatpush3.bf16.msra.mxu0 %v1609_v29 }
 0x2fb   :  { %1345 = vmatprep.subr.bf16.mxu0 %v1504_v0 }
 0x2fe   :  { %1347 = vmatpush3.bf16.msra.mxu0 %v1615_v32 }
 0x2ff   :  { %1372 = vmatprep.subr.bf16.mxu0 %v1504_v0 }
 0x3b4   :  { %v445_v52 = vpop.f32.mrb[4].mxu0 }
 0x3b5   :  { %v449_v53 = vadd.f32 %v445_v52, %v378_v51  ;;  %v1057_v54 = vpop.f32.mrb[5].mxu0 }
 0x3b7   :  { %v450_v55 = vmax.f32 %v449_v53, 0.0 }
 0x3b9   :  { %451 = vst [vmem:[#allocation9 + $0x3] sm:$0x1] %v450_v55  ;;  %1091 = vmatmul.mubr.f32.vlgmr.msra.gmra.mrb[4].mxu1 %v450_v55 }
 0x3ba   :  { %1350 = vmatpush3.bf16.msra.mxu1 %v1577_v5  ;;  %1160 = vmatprep.mubr.msk.f32.mxu1 %vm1506_vm0, %v1505_v1 }
 0x3bb   :  { %1351 = vmatprep.subr.bf16.mxu1 %v1504_v0 }
 0x3be   :  { %1353 = vmatpush3.bf16.msra.mxu1 %v1580_v8 }
 0x3bf   :  { %1354 = vmatprep.subr.bf16.mxu1 %v1504_v0 }
 0x3c2   :  { %1356 = vmatpush3.bf16.msra.mxu1 %v1584_v16 }
 0x3c3   :  { %1357 = vmatprep.subr.bf16.mxu1 %v1504_v0 }
 0x3c6   :  { %1359 = vmatpush3.bf16.msra.mxu1 %v1589_v20 }
 0x3c7   :  { %1360 = vmatprep.subr.bf16.mxu1 %v1504_v0 }
 0x3ca   :  { %1362 = vmatpush3.bf16.msra.mxu1 %v1597_v23 }
 0x3cb   :  { %1363 = vmatprep.subr.bf16.mxu1 %v1504_v0 }
 0x3ce   :  { %1365 = vmatpush3.bf16.msra.mxu1 %v1603_v26 }
 0x3cf   :  { %1366 = vmatprep.subr.bf16.mxu1 %v1504_v0 }
 0x3d2   :  { %1368 = vmatpush3.bf16.msra.mxu1 %v1609_v29 }
 0x3d3   :  { %1369 = vmatprep.subr.bf16.mxu1 %v1504_v0 }
 0x3d6   :  { %1371 = vmatpush3.bf16.msra.mxu1 %v1615_v32 }
 0x48c   :  { %v519_v57 = vpop.f32.mrb[4].mxu1 }
 0x48d   :  { %v523_v58 = vadd.f32 %v519_v57, %v452_v56  ;;  %v1092_v59 = vpop.f32.mrb[5].mxu1 }
 0x48f   :  { %v524_v60 = vmax.f32 %v523_v58, 0.0 }
 0x491   :  { %525 = vst [vmem:[#allocation9 + $0x4] sm:$0x1] %v524_v60  ;;  %1126 = vmatmul.mubr.f32.vlgmr.msra.gmra.mrb[6].mxu0 %v524_v60 }
 0x492   :  { %1374 = vmatpush3.bf16.msra.mxu0 %v1577_v5  ;;  %1195 = vmatprep.mubr.msk.f32.mxu0 %vm1506_vm0, %v1505_v1 }
 0x493   :  { %1375 = vmatprep.subr.bf16.mxu0 %v1504_v0 }
 0x496   :  { %1377 = vmatpush3.bf16.msra.mxu0 %v1580_v8  ;;  %v674_v8 = vld [vmem:[#allocation9 + $0x7] sm:$0x1] }
 0x497   :  { %1378 = vmatprep.subr.bf16.mxu0 %v1504_v0 }
 0x49a   :  { %1380 = vmatpush3.bf16.msra.mxu0 %v1584_v16 }
 0x49b   :  { %1381 = vmatprep.subr.bf16.mxu0 %v1504_v0 }
 0x49e   :  { %1383 = vmatpush3.bf16.msra.mxu0 %v1589_v20 }
 0x49f   :  { %1384 = vmatprep.subr.bf16.mxu0 %v1504_v0 }
 0x4a2   :  { %1386 = vmatpush3.bf16.msra.mxu0 %v1597_v23 }
 0x4a3   :  { %1387 = vmatprep.subr.bf16.mxu0 %v1504_v0 }
 0x4a6   :  { %1389 = vmatpush3.bf16.msra.mxu0 %v1603_v26 }
 0x4a7   :  { %1390 = vmatprep.subr.bf16.mxu0 %v1504_v0 }
 0x4aa   :  { %1392 = vmatpush3.bf16.msra.mxu0 %v1609_v29 }
 0x4ab   :  { %1393 = vmatprep.subr.bf16.mxu0 %v1504_v0 }
 0x4ae   :  { %1395 = vmatpush3.bf16.msra.mxu0 %v1615_v32 }
 0x564   :  { %v593_v62 = vpop.f32.mrb[6].mxu0 }
 0x565   :  { %v597_v63 = vadd.f32 %v593_v62, %v526_v61  ;;  %v1127_v1 = vpop.f32.mrb[7].mxu0 }
 0x567   :  { %v598_v2 = vmax.f32 %v597_v63, 0.0 }
 0x569   :  { %599 = vst [vmem:[#allocation9 + $0x5] sm:$0x1] %v598_v2  ;;  %1161 = vmatmul.mubr.f32.vlgmr.msra.gmra.mrb[6].mxu1 %v598_v2 }
 0x63c   :  { %v667_v4 = vpop.f32.mrb[6].mxu1 }
 0x63d   :  { %v671_v5 = vadd.f32 %v667_v4, %v600_v3  ;;  %v1162_v6 = vpop.f32.mrb[7].mxu1 }
 0x63f   :  { %v672_v7 = vmax.f32 %v671_v5, 0.0 }
 0x641   :  { %673 = vst [vmem:[#allocation9 + $0x6] sm:$0x1] %v672_v7  ;;  %1196 = vmatmul.mubr.f32.vlgmr.msra.gmra.mrb[8].mxu0 %v672_v7 }
 0x714   :  { %v741_v9 = vpop.f32.mrb[8].mxu0 }
 0x715   :  { %v745_v0 = vadd.f32 %v741_v9, %v674_v8  ;;  %v1197_v10 = vpop.f32.mrb[9].mxu0 }
 0x717   :  { %v746_v11 = vmax.f32 %v745_v0, 0.0 }
 0x719   :  { %747 = vst [vmem:[#allocation9 + $0x7] sm:$0x1] %v746_v11  ;;  %748 = vst [vmem:[#allocation2] sm:$0x1] %v746_v11 }
 0x71a   :  { %1482 = shalt.err (!%p1479_p0)
}
 0x71b   :  { %s1483_s25 = scalar_lea.hbm %s1750_s3, 128 }
 0x71c   :  { %p1484_p1 = scmp.ne.s32.totalorder %s1750_s3, %s1483_s25  ;;  %p1487_p2 = scmp.lt.u32.totalorder %s1483_s25, %s1750_s3 }
 0x71e   :  { %p1489_p3 = pnand %p1487_p2, %p1484_p1 }
 0x720   :  { %1492 = shalt.err (!%p1489_p3)
}
 0x721   :  { %758 = dma.vmem_to_hbm [thread:$0]  %s756_s21, 128, %s1750_s3, [#allocation5]  }
 0x722   :  { %1497 = dma.done.wait [#allocation5], 128  }
 0x723   :  { %1498 = vsyncadd [#allocation5], 4294967168 }
 0x724   :  { %762 = vsyncpa [#allocation4], 1 }
 0x725   :  { %763 = vsyncpa [#allocation7], 1 }
 0x726   :  { %764 = vsyncpa [#allocation5], 1 }

</bundles_post_ra>
